<compile_context>
chip_gen: v6e
topology: v6e:2x2x1
jax: 0.10.0
libtpu: 0.0.40
codegen_flags: <defaults>
</compile_context>

<pallas_src>
import functools

import jax
import jax.numpy as jnp
import numpy as np
from jax.experimental import pallas as pl
from jax.experimental.pallas import tpu as pltpu


def _cross_attn_kernel(v1_ref, v2_ref, wq_ref, wk_ref, qnw_ref, knw_ref,
                       out_ref, *, num_heads, num_kv_heads, head_dim, eps):
    groups = num_heads // num_kv_heads
    contract_on_dim1 = (((1,), (1,)), ((), ()))

    # Fused lane-dense projections (bf16 in, f32 out).
    q_all = jax.lax.dot_general(v1_ref[...], wq_ref[...], contract_on_dim1,
                                preferred_element_type=jnp.float32)  # (tb1, H*hd)
    k_all = jax.lax.dot_general(v2_ref[...], wk_ref[...], contract_on_dim1,
                                preferred_element_type=jnp.float32)  # (B2, KVH*hd)

    qnw = qnw_ref[...]  # (1, hd); head_dim**-0.5 already folded in
    knw = knw_ref[...]  # (1, hd)

    # Normalize K once per kv-head (shared by all q-heads of the group).
    k_norm = []
    for g in range(num_kv_heads):
        k_g = k_all[:, g * head_dim:(g + 1) * head_dim]
        k_var = jnp.mean(k_g * k_g, axis=-1, keepdims=True)
        k_norm.append(k_g * jax.lax.rsqrt(k_var + eps) * knw)

    acc = jnp.zeros(out_ref.shape, jnp.float32)
    for h in range(num_heads):  # static unroll: num_heads is a compile-time constant
        q_h = q_all[:, h * head_dim:(h + 1) * head_dim]
        q_var = jnp.mean(q_h * q_h, axis=-1, keepdims=True)
        q_n = q_h * jax.lax.rsqrt(q_var + eps) * qnw  # scaling rides this multiply
        k_n = k_norm[h // groups]
        scores = jax.lax.dot_general(q_n, k_n, contract_on_dim1,
                                     preferred_element_type=jnp.float32)  # (tb1, B2)
        scores = scores - jnp.max(scores, axis=-1, keepdims=True)
        e = jnp.exp(scores)
        inv_den = pl.reciprocal(jnp.sum(e, axis=-1, keepdims=True), approx=True)
        acc = acc + e * inv_den

    out_ref[...] = acc * (1.0 / num_heads)


def cross_attention_forward(vectors_1, vectors_2, wq, wk, q_norm_w, k_norm_w,
                            *, num_heads, num_kv_heads, head_dim, eps=1e-6,
                            b1_tile=256):
    """vectors_1: (B1, H), vectors_2: (B2, H)
    wq: (num_heads*head_dim, H)   (PyTorch Linear weight layout, bias=False)
    wk: (num_kv_heads*head_dim, H)
    q_norm_w / k_norm_w: (head_dim,)
    returns: (B1, B2) float32 attention matrix (softmax over B2, mean over heads).
    """
    b1, hidden = vectors_1.shape
    b2, _ = vectors_2.shape
    assert num_heads % num_kv_heads == 0

    tb1 = b1 if b1 <= b1_tile else b1_tile
    n_tiles = pl.cdiv(b1, tb1)

    # bf16 for the MXU projections; norm weights stay f32 (applied post-matmul).
    v1 = vectors_1.astype(jnp.bfloat16)
    v2 = vectors_2.astype(jnp.bfloat16)
    wq_b = wq.astype(jnp.bfloat16)   # keep PyTorch layout; contract on hidden
    wk_b = wk.astype(jnp.bfloat16)
    # Fold head_dim**-0.5 attention scaling into the q-norm weight.
    qnw = (q_norm_w.astype(jnp.float32) * head_dim ** (-0.5)).reshape(1, head_dim)
    knw = k_norm_w.astype(jnp.float32).reshape(1, head_dim)

    kernel = functools.partial(_cross_attn_kernel, num_heads=num_heads,
                               num_kv_heads=num_kv_heads, head_dim=head_dim,
                               eps=eps)

    return pl.pallas_call(
        kernel,
        out_shape=jax.ShapeDtypeStruct((b1, b2), jnp.float32),
        grid_spec=pltpu.PrefetchScalarGridSpec(
            num_scalar_prefetch=0,
            grid=(n_tiles,),
            in_specs=[
                pl.BlockSpec((tb1, hidden), lambda i: (i, 0)),
                pl.BlockSpec((b2, hidden), lambda i: (0, 0)),
                pl.BlockSpec((num_heads * head_dim, hidden), lambda i: (0, 0)),
                pl.BlockSpec((num_kv_heads * head_dim, hidden), lambda i: (0, 0)),
                pl.BlockSpec((1, head_dim), lambda i: (0, 0)),
                pl.BlockSpec((1, head_dim), lambda i: (0, 0)),
            ],
            out_specs=pl.BlockSpec((tb1, b2), lambda i: (i, 0)),
        ),
        compiler_params=pltpu.CompilerParams(
            dimension_semantics=("parallel",),
            vmem_limit_bytes=48 * 1024 * 1024),
    )(v1, v2, wq_b, wk_b, qnw, knw)


def _reference(vectors_1, vectors_2, wq, wk, q_norm_w, k_norm_w,
               *, num_heads, num_kv_heads, head_dim, eps=1e-6):
    """Pure-JAX f32 reference mirroring the PyTorch forward."""
    b1 = vectors_1.shape[0]
    b2 = vectors_2.shape[0]
    groups = num_heads // num_kv_heads
    q = (vectors_1 @ wq.T).reshape(b1, num_heads, head_dim).transpose(1, 0, 2)
    k = (vectors_2 @ wk.T).reshape(b2, num_kv_heads, head_dim).transpose(1, 0, 2)

    def rms(x, w):
        var = jnp.mean(x.astype(jnp.float32) ** 2, axis=-1, keepdims=True)
        return w * (x * jax.lax.rsqrt(var + eps))

    q = rms(q, q_norm_w)
    k = rms(k, k_norm_w)
    if groups > 1:
        k = jnp.repeat(k, groups, axis=0)
    scores = jnp.einsum("hqd,hkd->hqk", q, k) * head_dim ** (-0.5)
    weights = jax.nn.softmax(scores, axis=-1)
    return jnp.mean(weights, axis=0)


if __name__ == "__main__":
    # Small Qwen3-like config.
    hidden_size = 32
    num_attention_heads = 4
    num_key_value_heads = 2
    head_dim = 8
    b1, b2 = 8, 8

    key = jax.random.PRNGKey(0)
    k_v1, k_v2, k_wq, k_wk, k_qn, k_kn = jax.random.split(key, 6)

    vectors_1 = jax.random.normal(k_v1, (b1, hidden_size), dtype=jnp.float32)
    vectors_2 = jax.random.normal(k_v2, (b2, hidden_size), dtype=jnp.float32)
    # PyTorch Linear weight layout: (out_features, in_features), bias=False.
    wq = jax.random.normal(k_wq, (num_attention_heads * head_dim, hidden_size),
                           dtype=jnp.float32) * 0.1
    wk = jax.random.normal(k_wk, (num_key_value_heads * head_dim, hidden_size),
                           dtype=jnp.float32) * 0.1
    # RMSNorm weights (module inits to ones; perturb slightly to exercise the multiply).
    q_norm_w = 1.0 + 0.05 * jax.random.normal(k_qn, (head_dim,), dtype=jnp.float32)
    k_norm_w = 1.0 + 0.05 * jax.random.normal(k_kn, (head_dim,), dtype=jnp.float32)

    out = cross_attention_forward(
        vectors_1, vectors_2, wq, wk, q_norm_w, k_norm_w,
        num_heads=num_attention_heads, num_kv_heads=num_key_value_heads,
        head_dim=head_dim)
    out = jax.block_until_ready(out)

    ref = _reference(vectors_1, vectors_2, wq, wk, q_norm_w, k_norm_w,
                     num_heads=num_attention_heads,
                     num_kv_heads=num_key_value_heads, head_dim=head_dim)
    # bf16 MXU inputs + approx reciprocal => looser tolerance than pure-f32.
    np.testing.assert_allclose(np.asarray(out), np.asarray(ref),
                               rtol=2e-2, atol=2e-2)
    assert out.shape == (b1, b2)
    print("KERNEL_OK")
</pallas_src>

<mosaic_0001>
module attributes {stable_mosaic.version = 11 : i64} {
  func.func @_cross_attn_kernel(%arg0: i32, %arg1: memref<8x32xbf16, #tpu.memory_space<vmem>>, %arg2: memref<8x32xbf16, #tpu.memory_space<vmem>>, %arg3: memref<32x32xbf16, #tpu.memory_space<vmem>>, %arg4: memref<16x32xbf16, #tpu.memory_space<vmem>>, %arg5: memref<1x8xf32, #tpu.memory_space<vmem>>, %arg6: memref<1x8xf32, #tpu.memory_space<vmem>>, %arg7: memref<8x8xf32, #tpu.memory_space<vmem>>) attributes {dimension_semantics = [#tpu.dimension_semantics<parallel>], iteration_bounds = array<i64: 1>, scalar_prefetch = 0 : i64, scratch_operands = 0 : i64, tpu.core_type = #tpu.core_type<tc>, window_params = [{transform_indices = @transform_0, window_bounds = array<i64: 8, 32>}, {pipeline_mode = #tpu.pipeline_mode<synchronous>, transform_indices = @transform_1, window_bounds = array<i64: 8, 32>}, {pipeline_mode = #tpu.pipeline_mode<synchronous>, transform_indices = @transform_2, window_bounds = array<i64: 32, 32>}, {pipeline_mode = #tpu.pipeline_mode<synchronous>, transform_indices = @transform_3, window_bounds = array<i64: 16, 32>}, {pipeline_mode = #tpu.pipeline_mode<synchronous>, transform_indices = @transform_4, window_bounds = array<i64: 1, 8>}, {pipeline_mode = #tpu.pipeline_mode<synchronous>, transform_indices = @transform_5, window_bounds = array<i64: 1, 8>}, {transform_indices = @transform_6, window_bounds = array<i64: 8, 8>}]} {
    %c0 = arith.constant 0 : index
    %c0_0 = arith.constant 0 : index
    %0 = vector.load %arg1[%c0, %c0_0] : memref<8x32xbf16, #tpu.memory_space<vmem>>, vector<8x32xbf16>
    %c0_1 = arith.constant 0 : index
    %c0_2 = arith.constant 0 : index
    %1 = vector.load %arg3[%c0_1, %c0_2] : memref<32x32xbf16, #tpu.memory_space<vmem>>, vector<32x32xbf16>
    %cst = arith.constant dense<0.000000e+00> : vector<8x32xf32>
    %2 = tpu.matmul %0, %1, %cst {dimension_numbers = #tpu.dot_dimension_numbers<[1], [1], [0], [0], [0, 0, 1, 0], [], []>} : vector<8x32xbf16>, vector<32x32xbf16>, vector<8x32xf32> -> vector<8x32xf32>
    %c0_3 = arith.constant 0 : index
    %c0_4 = arith.constant 0 : index
    %3 = vector.load %arg2[%c0_3, %c0_4] : memref<8x32xbf16, #tpu.memory_space<vmem>>, vector<8x32xbf16>
    %c0_5 = arith.constant 0 : index
    %c0_6 = arith.constant 0 : index
    %4 = vector.load %arg4[%c0_5, %c0_6] : memref<16x32xbf16, #tpu.memory_space<vmem>>, vector<16x32xbf16>
    %cst_7 = arith.constant dense<0.000000e+00> : vector<8x16xf32>
    %5 = tpu.matmul %3, %4, %cst_7 {dimension_numbers = #tpu.dot_dimension_numbers<[1], [1], [0], [0], [0, 0, 1, 0], [], []>} : vector<8x32xbf16>, vector<16x32xbf16>, vector<8x16xf32> -> vector<8x16xf32>
    %c0_8 = arith.constant 0 : index
    %c0_9 = arith.constant 0 : index
    %6 = vector.load %arg5[%c0_8, %c0_9] : memref<1x8xf32, #tpu.memory_space<vmem>>, vector<1x8xf32>
    %c0_10 = arith.constant 0 : index
    %c0_11 = arith.constant 0 : index
    %7 = vector.load %arg6[%c0_10, %c0_11] : memref<1x8xf32, #tpu.memory_space<vmem>>, vector<1x8xf32>
    %8 = vector.extract_strided_slice %5 {offsets = [0, 0], sizes = [8, 8], strides = [1, 1]} : vector<8x16xf32> to vector<8x8xf32>
    %9 = arith.mulf %8, %8 : vector<8x8xf32>
    %cst_12 = arith.constant dense<0.000000e+00> : vector<8xf32>
    %10 = vector.multi_reduction <add>, %9, %cst_12 [1] : vector<8x8xf32> to vector<8xf32>
    %11 = vector.shape_cast %10 : vector<8xf32> to vector<8x1xf32>
    %cst_13 = arith.constant 8.000000e+00 : f32
    %12 = vector.broadcast %cst_13 : f32 to vector<8x1xf32>
    %13 = arith.divf %11, %12 : vector<8x1xf32>
    %cst_14 = arith.constant 9.99999997E-7 : f32
    %14 = vector.broadcast %cst_14 : f32 to vector<8x1xf32>
    %15 = arith.addf %13, %14 : vector<8x1xf32>
    %16 = math.rsqrt %15 : vector<8x1xf32>
    %17 = vector.broadcast %16 : vector<8x1xf32> to vector<8x8xf32>
    %18 = arith.mulf %8, %17 : vector<8x8xf32>
    %19 = vector.broadcast %7 : vector<1x8xf32> to vector<8x8xf32>
    %20 = arith.mulf %18, %19 : vector<8x8xf32>
    %21 = vector.extract_strided_slice %5 {offsets = [0, 8], sizes = [8, 8], strides = [1, 1]} : vector<8x16xf32> to vector<8x8xf32>
    %22 = arith.mulf %21, %21 : vector<8x8xf32>
    %cst_15 = arith.constant dense<0.000000e+00> : vector<8xf32>
    %23 = vector.multi_reduction <add>, %22, %cst_15 [1] : vector<8x8xf32> to vector<8xf32>
    %24 = vector.shape_cast %23 : vector<8xf32> to vector<8x1xf32>
    %cst_16 = arith.constant 8.000000e+00 : f32
    %25 = vector.broadcast %cst_16 : f32 to vector<8x1xf32>
    %26 = arith.divf %24, %25 : vector<8x1xf32>
    %cst_17 = arith.constant 9.99999997E-7 : f32
    %27 = vector.broadcast %cst_17 : f32 to vector<8x1xf32>
    %28 = arith.addf %26, %27 : vector<8x1xf32>
    %29 = math.rsqrt %28 : vector<8x1xf32>
    %30 = vector.broadcast %29 : vector<8x1xf32> to vector<8x8xf32>
    %31 = arith.mulf %21, %30 : vector<8x8xf32>
    %32 = vector.broadcast %7 : vector<1x8xf32> to vector<8x8xf32>
    %33 = arith.mulf %31, %32 : vector<8x8xf32>
    %cst_18 = arith.constant 0.000000e+00 : f32
    %34 = vector.broadcast %cst_18 : f32 to vector<8x8xf32>
    %35 = vector.extract_strided_slice %2 {offsets = [0, 0], sizes = [8, 8], strides = [1, 1]} : vector<8x32xf32> to vector<8x8xf32>
    %36 = arith.mulf %35, %35 : vector<8x8xf32>
    %cst_19 = arith.constant dense<0.000000e+00> : vector<8xf32>
    %37 = vector.multi_reduction <add>, %36, %cst_19 [1] : vector<8x8xf32> to vector<8xf32>
    %38 = vector.shape_cast %37 : vector<8xf32> to vector<8x1xf32>
    %cst_20 = arith.constant 8.000000e+00 : f32
    %39 = vector.broadcast %cst_20 : f32 to vector<8x1xf32>
    %40 = arith.divf %38, %39 : vector<8x1xf32>
    %cst_21 = arith.constant 9.99999997E-7 : f32
    %41 = vector.broadcast %cst_21 : f32 to vector<8x1xf32>
    %42 = arith.addf %40, %41 : vector<8x1xf32>
    %43 = math.rsqrt %42 : vector<8x1xf32>
    %44 = vector.broadcast %43 : vector<8x1xf32> to vector<8x8xf32>
    %45 = arith.mulf %35, %44 : vector<8x8xf32>
    %46 = vector.broadcast %6 : vector<1x8xf32> to vector<8x8xf32>
    %47 = arith.mulf %45, %46 : vector<8x8xf32>
    %cst_22 = arith.constant dense<0.000000e+00> : vector<8x8xf32>
    %48 = tpu.matmul %47, %20, %cst_22 {dimension_numbers = #tpu.dot_dimension_numbers<[1], [1], [0], [0], [0, 0, 1, 0], [], []>} : vector<8x8xf32>, vector<8x8xf32>, vector<8x8xf32> -> vector<8x8xf32>
    %cst_23 = arith.constant dense<0xFF800000> : vector<8xf32>
    %49 = vector.multi_reduction <maximumf>, %48, %cst_23 [1] : vector<8x8xf32> to vector<8xf32>
    %50 = vector.shape_cast %49 : vector<8xf32> to vector<8x1xf32>
    %51 = vector.broadcast %50 : vector<8x1xf32> to vector<8x8xf32>
    %52 = arith.subf %48, %51 : vector<8x8xf32>
    %53 = math.exp %52 : vector<8x8xf32>
    %cst_24 = arith.constant dense<0.000000e+00> : vector<8xf32>
    %54 = vector.multi_reduction <add>, %53, %cst_24 [1] : vector<8x8xf32> to vector<8xf32>
    %55 = vector.shape_cast %54 : vector<8xf32> to vector<8x1xf32>
    %56 = tpu.reciprocal %55 {approx = true} : vector<8x1xf32> -> vector<8x1xf32>
    %57 = vector.broadcast %56 : vector<8x1xf32> to vector<8x8xf32>
    %58 = arith.mulf %53, %57 : vector<8x8xf32>
    %59 = arith.addf %34, %58 : vector<8x8xf32>
    %60 = vector.extract_strided_slice %2 {offsets = [0, 8], sizes = [8, 8], strides = [1, 1]} : vector<8x32xf32> to vector<8x8xf32>
    %61 = arith.mulf %60, %60 : vector<8x8xf32>
    %cst_25 = arith.constant dense<0.000000e+00> : vector<8xf32>
    %62 = vector.multi_reduction <add>, %61, %cst_25 [1] : vector<8x8xf32> to vector<8xf32>
    %63 = vector.shape_cast %62 : vector<8xf32> to vector<8x1xf32>
    %cst_26 = arith.constant 8.000000e+00 : f32
    %64 = vector.broadcast %cst_26 : f32 to vector<8x1xf32>
    %65 = arith.divf %63, %64 : vector<8x1xf32>
    %cst_27 = arith.constant 9.99999997E-7 : f32
    %66 = vector.broadcast %cst_27 : f32 to vector<8x1xf32>
    %67 = arith.addf %65, %66 : vector<8x1xf32>
    %68 = math.rsqrt %67 : vector<8x1xf32>
    %69 = vector.broadcast %68 : vector<8x1xf32> to vector<8x8xf32>
    %70 = arith.mulf %60, %69 : vector<8x8xf32>
    %71 = vector.broadcast %6 : vector<1x8xf32> to vector<8x8xf32>
    %72 = arith.mulf %70, %71 : vector<8x8xf32>
    %cst_28 = arith.constant dense<0.000000e+00> : vector<8x8xf32>
    %73 = tpu.matmul %72, %20, %cst_28 {dimension_numbers = #tpu.dot_dimension_numbers<[1], [1], [0], [0], [0, 0, 1, 0], [], []>} : vector<8x8xf32>, vector<8x8xf32>, vector<8x8xf32> -> vector<8x8xf32>
    %cst_29 = arith.constant dense<0xFF800000> : vector<8xf32>
    %74 = vector.multi_reduction <maximumf>, %73, %cst_29 [1] : vector<8x8xf32> to vector<8xf32>
    %75 = vector.shape_cast %74 : vector<8xf32> to vector<8x1xf32>
    %76 = vector.broadcast %75 : vector<8x1xf32> to vector<8x8xf32>
    %77 = arith.subf %73, %76 : vector<8x8xf32>
    %78 = math.exp %77 : vector<8x8xf32>
    %cst_30 = arith.constant dense<0.000000e+00> : vector<8xf32>
    %79 = vector.multi_reduction <add>, %78, %cst_30 [1] : vector<8x8xf32> to vector<8xf32>
    %80 = vector.shape_cast %79 : vector<8xf32> to vector<8x1xf32>
    %81 = tpu.reciprocal %80 {approx = true} : vector<8x1xf32> -> vector<8x1xf32>
    %82 = vector.broadcast %81 : vector<8x1xf32> to vector<8x8xf32>
    %83 = arith.mulf %78, %82 : vector<8x8xf32>
    %84 = arith.addf %59, %83 : vector<8x8xf32>
    %85 = vector.extract_strided_slice %2 {offsets = [0, 16], sizes = [8, 8], strides = [1, 1]} : vector<8x32xf32> to vector<8x8xf32>
    %86 = arith.mulf %85, %85 : vector<8x8xf32>
    %cst_31 = arith.constant dense<0.000000e+00> : vector<8xf32>
    %87 = vector.multi_reduction <add>, %86, %cst_31 [1] : vector<8x8xf32> to vector<8xf32>
    %88 = vector.shape_cast %87 : vector<8xf32> to vector<8x1xf32>
    %cst_32 = arith.constant 8.000000e+00 : f32
    %89 = vector.broadcast %cst_32 : f32 to vector<8x1xf32>
    %90 = arith.divf %88, %89 : vector<8x1xf32>
    %cst_33 = arith.constant 9.99999997E-7 : f32
    %91 = vector.broadcast %cst_33 : f32 to vector<8x1xf32>
    %92 = arith.addf %90, %91 : vector<8x1xf32>
    %93 = math.rsqrt %92 : vector<8x1xf32>
    %94 = vector.broadcast %93 : vector<8x1xf32> to vector<8x8xf32>
    %95 = arith.mulf %85, %94 : vector<8x8xf32>
    %96 = vector.broadcast %6 : vector<1x8xf32> to vector<8x8xf32>
    %97 = arith.mulf %95, %96 : vector<8x8xf32>
    %cst_34 = arith.constant dense<0.000000e+00> : vector<8x8xf32>
    %98 = tpu.matmul %97, %33, %cst_34 {dimension_numbers = #tpu.dot_dimension_numbers<[1], [1], [0], [0], [0, 0, 1, 0], [], []>} : vector<8x8xf32>, vector<8x8xf32>, vector<8x8xf32> -> vector<8x8xf32>
    %cst_35 = arith.constant dense<0xFF800000> : vector<8xf32>
    %99 = vector.multi_reduction <maximumf>, %98, %cst_35 [1] : vector<8x8xf32> to vector<8xf32>
    %100 = vector.shape_cast %99 : vector<8xf32> to vector<8x1xf32>
    %101 = vector.broadcast %100 : vector<8x1xf32> to vector<8x8xf32>
    %102 = arith.subf %98, %101 : vector<8x8xf32>
    %103 = math.exp %102 : vector<8x8xf32>
    %cst_36 = arith.constant dense<0.000000e+00> : vector<8xf32>
    %104 = vector.multi_reduction <add>, %103, %cst_36 [1] : vector<8x8xf32> to vector<8xf32>
    %105 = vector.shape_cast %104 : vector<8xf32> to vector<8x1xf32>
    %106 = tpu.reciprocal %105 {approx = true} : vector<8x1xf32> -> vector<8x1xf32>
    %107 = vector.broadcast %106 : vector<8x1xf32> to vector<8x8xf32>
    %108 = arith.mulf %103, %107 : vector<8x8xf32>
    %109 = arith.addf %84, %108 : vector<8x8xf32>
    %110 = vector.extract_strided_slice %2 {offsets = [0, 24], sizes = [8, 8], strides = [1, 1]} : vector<8x32xf32> to vector<8x8xf32>
    %111 = arith.mulf %110, %110 : vector<8x8xf32>
    %cst_37 = arith.constant dense<0.000000e+00> : vector<8xf32>
    %112 = vector.multi_reduction <add>, %111, %cst_37 [1] : vector<8x8xf32> to vector<8xf32>
    %113 = vector.shape_cast %112 : vector<8xf32> to vector<8x1xf32>
    %cst_38 = arith.constant 8.000000e+00 : f32
    %114 = vector.broadcast %cst_38 : f32 to vector<8x1xf32>
    %115 = arith.divf %113, %114 : vector<8x1xf32>
    %cst_39 = arith.constant 9.99999997E-7 : f32
    %116 = vector.broadcast %cst_39 : f32 to vector<8x1xf32>
    %117 = arith.addf %115, %116 : vector<8x1xf32>
    %118 = math.rsqrt %117 : vector<8x1xf32>
    %119 = vector.broadcast %118 : vector<8x1xf32> to vector<8x8xf32>
    %120 = arith.mulf %110, %119 : vector<8x8xf32>
    %121 = vector.broadcast %6 : vector<1x8xf32> to vector<8x8xf32>
    %122 = arith.mulf %120, %121 : vector<8x8xf32>
    %cst_40 = arith.constant dense<0.000000e+00> : vector<8x8xf32>
    %123 = tpu.matmul %122, %33, %cst_40 {dimension_numbers = #tpu.dot_dimension_numbers<[1], [1], [0], [0], [0, 0, 1, 0], [], []>} : vector<8x8xf32>, vector<8x8xf32>, vector<8x8xf32> -> vector<8x8xf32>
    %cst_41 = arith.constant dense<0xFF800000> : vector<8xf32>
    %124 = vector.multi_reduction <maximumf>, %123, %cst_41 [1] : vector<8x8xf32> to vector<8xf32>
    %125 = vector.shape_cast %124 : vector<8xf32> to vector<8x1xf32>
    %126 = vector.broadcast %125 : vector<8x1xf32> to vector<8x8xf32>
    %127 = arith.subf %123, %126 : vector<8x8xf32>
    %128 = math.exp %127 : vector<8x8xf32>
    %cst_42 = arith.constant dense<0.000000e+00> : vector<8xf32>
    %129 = vector.multi_reduction <add>, %128, %cst_42 [1] : vector<8x8xf32> to vector<8xf32>
    %130 = vector.shape_cast %129 : vector<8xf32> to vector<8x1xf32>
    %131 = tpu.reciprocal %130 {approx = true} : vector<8x1xf32> -> vector<8x1xf32>
    %132 = vector.broadcast %131 : vector<8x1xf32> to vector<8x8xf32>
    %133 = arith.mulf %128, %132 : vector<8x8xf32>
    %134 = arith.addf %109, %133 : vector<8x8xf32>
    %cst_43 = arith.constant 2.500000e-01 : f32
    %135 = vector.broadcast %cst_43 : f32 to vector<8x8xf32>
    %136 = arith.mulf %134, %135 : vector<8x8xf32>
    %c0_44 = arith.constant 0 : index
    %c0_45 = arith.constant 0 : index
    %137 = vector.load %arg7[%c0_44, %c0_45] : memref<8x8xf32, #tpu.memory_space<vmem>>, vector<8x8xf32>
    tpu.vector_store %arg7[%c0_44, %c0_45], %136 {strides = array<i32>} : memref<8x8xf32, #tpu.memory_space<vmem>>, vector<8x8xf32>,
    return
  }
  func.func @transform_0(%arg0: i32) -> (i32, i32) {
    %c0_i32 = arith.constant 0 : i32
    %c0_i32_0 = arith.constant 0 : i32
    return %arg0, %c0_i32 : i32, i32
  }
  func.func @transform_1(%arg0: i32) -> (i32, i32) {
    %c0_i32 = arith.constant 0 : i32
    %c0_i32_0 = arith.constant 0 : i32
    %c0_i32_1 = arith.constant 0 : i32
    return %c0_i32, %c0_i32_0 : i32, i32
  }
  func.func @transform_2(%arg0: i32) -> (i32, i32) {
    %c0_i32 = arith.constant 0 : i32
    %c0_i32_0 = arith.constant 0 : i32
    %c0_i32_1 = arith.constant 0 : i32
    return %c0_i32, %c0_i32_0 : i32, i32
  }
  func.func @transform_3(%arg0: i32) -> (i32, i32) {
    %c0_i32 = arith.constant 0 : i32
    %c0_i32_0 = arith.constant 0 : i32
    %c0_i32_1 = arith.constant 0 : i32
    return %c0_i32, %c0_i32_0 : i32, i32
  }
  func.func @transform_4(%arg0: i32) -> (i32, i32) {
    %c0_i32 = arith.constant 0 : i32
    %c0_i32_0 = arith.constant 0 : i32
    %c0_i32_1 = arith.constant 0 : i32
    return %c0_i32, %c0_i32_0 : i32, i32
  }
  func.func @transform_5(%arg0: i32) -> (i32, i32) {
    %c0_i32 = arith.constant 0 : i32
    %c0_i32_0 = arith.constant 0 : i32
    %c0_i32_1 = arith.constant 0 : i32
    return %c0_i32, %c0_i32_0 : i32, i32
  }
  func.func @transform_6(%arg0: i32) -> (i32, i32) {
    %c0_i32 = arith.constant 0 : i32
    %c0_i32_0 = arith.constant 0 : i32
    return %arg0, %c0_i32 : i32, i32
  }
}

</mosaic_0001>

<bundles_post_ra>
// kernel: tpu_custom_call.1
= control target key start
LH: loop header
LB: loop body
LE: loop exit
PB: predicated region body
PF: predicated region fallthrough
CT: control target
= control target key end

     0   :  { %11 = vsyncpa [#allocation3], 0  ;;  %s1020_s0 = inlined_call_operand.hbm [shape: bf16[8,32], index: 0, kind: input, shape index: {}]   ;;  %s1021_s1 = inlined_call_operand.hbm [shape: bf16[8,32], index: 1, kind: input, shape index: {}]   ;;  %s1022_s2 = inlined_call_operand.hbm [shape: bf16[32,32], index: 2, kind: input, shape index: {}]   ;;  %s1023_s3 = inlined_call_operand.hbm [shape: bf16[16,32], index: 3, kind: input, shape index: {}]   ;;  %s1024_s4 = inlined_call_operand.vmem [shape: f32[1,8], index: 4, kind: input, shape index: {}]   ;;  %s1025_s5 = inlined_call_operand.vmem [shape: f32[1,8], index: 5, kind: input, shape index: {}]   ;;  %s1026_s6 = inlined_call_operand.hbm [shape: f32[8,8], index: 6, kind: output, shape index: {}]  }
   0x1   :  { %12 = vsyncpa [#allocation6], 0 }
   0x2   :  { %13 = vsyncpa [#allocation9], 0 }
   0x3   :  { %14 = vsyncpa [#allocation4], 0  ;;  %s876_s21 = smov [#allocation5]   ;;  %s877_s23 = smov [#allocation2]  }
   0x4   :  { %s31_s22 = sshll.u32 %s876_s21, 4  ;;  %s21_s24 = sshll.u32 %s877_s23, 4  ;;  %s32_s22 = int_to_ptr.vmem [resolvable:$true] %s31_s22  ;;  %s22_s24 = int_to_ptr.vmem [resolvable:$true] %s21_s24 }
   0x5   :  { %s776_s25 = scalar_lea.vmem %s32_s22, 64  ;;  %p781_p1 = scmp.lt.s32.totalorder %s32_s22, %s32_s22 }
   0x6   :  { %p777_p0 = scmp.ne.s32.totalorder %s32_s22, %s776_s25  ;;  %p782_p2 = scmp.lt.s32.totalorder %s776_s25, %s776_s25 }
   0x8   :  { %p783_p3 = por %p782_p2, %p781_p1 }
   0xa   :  { %p784_p4 = pnand %p783_p3, %p777_p0 }
   0xc   :  { %787 = shalt.err (!%p784_p4)
}
   0xd   :  { %34 = dma.hbm_to_vmem [thread:$0]  %s1021_s1, 64, %s32_s22, [#allocation6]  }
   0xe   :  { %s796_s28 = scalar_lea.vmem %s22_s24, 64  ;;  %p801_p6 = scmp.lt.s32.totalorder %s22_s24, %s22_s24 }
   0xf   :  { %p797_p5 = scmp.ne.s32.totalorder %s22_s24, %s796_s28  ;;  %p802_p7 = scmp.lt.s32.totalorder %s796_s28, %s796_s28 }
  0x11   :  { %p803_p8 = por %p802_p7, %p801_p6 }
  0x13   :  { %p804_p9 = pnand %p803_p8, %p797_p5 }
  0x15   :  { %807 = shalt.err (!%p804_p9)
}
  0x16   :  { %24 = dma.hbm_to_vmem [thread:$0]  %s1020_s0, 64, %s22_s24, [#allocation3]  }
  0x17   :  { %s878_s7 = smov [#allocation7]  }
  0x18   :  { %s40_s8 = sshll.u32 %s878_s7, 4  ;;  %s41_s8 = int_to_ptr.vmem [resolvable:$true] %s40_s8 }
  0x19   :  { %s816_s9 = scalar_lea.vmem %s41_s8, 256  ;;  %p821_p11 = scmp.lt.s32.totalorder %s41_s8, %s41_s8 }
  0x1a   :  { %p817_p10 = scmp.ne.s32.totalorder %s41_s8, %s816_s9  ;;  %p822_p12 = scmp.lt.s32.totalorder %s816_s9, %s816_s9 }
  0x1c   :  { %p823_p13 = por %p822_p12, %p821_p11 }
  0x1e   :  { %p824_p0 = pnand %p823_p13, %p817_p10 }
  0x20   :  { %827 = shalt.err (!%p824_p0)
}
  0x21   :  { %s879_s1 = smov 64   ;;  %s880_s10 = smov 4  }
  0x22   :  { %46 = dma.hbm_to_vmem [thread:$0]  %s1022_s2, 256, %s41_s8, [#allocation6], %s879_s1, %s879_s1, %s880_s10  }
  0x23   :  { %s881_s13 = smov [#allocation8]  }
  0x24   :  { %s52_s14 = sshll.u32 %s881_s13, 4  ;;  %s53_s14 = int_to_ptr.vmem [resolvable:$true] %s52_s14 }
  0x25   :  { %s836_s0 = scalar_lea.vmem %s53_s14, 128  ;;  %p841_p2 = scmp.lt.s32.totalorder %s53_s14, %s53_s14 }
  0x26   :  { %p837_p1 = scmp.ne.s32.totalorder %s53_s14, %s836_s0  ;;  %p842_p3 = scmp.lt.s32.totalorder %s836_s0, %s836_s0 }
  0x28   :  { %p843_p4 = por %p842_p3, %p841_p2 }
  0x2a   :  { %p844_p5 = pnand %p843_p4, %p837_p1 }
  0x2c   :  { %847 = shalt.err (!%p844_p5)
}
  0x2d   :  { %58 = dma.hbm_to_vmem [thread:$0]  %s1023_s3, 128, %s53_s14, [#allocation9], %s879_s1, %s879_s1, %s880_s10  }
  0x2e   :  { %868 = dma.done.wait [#allocation3], 64  }
  0x2f   :  { %869 = vsyncadd [#allocation3], 4294967232 }
  0x30   :  { %870 = dma.done.wait [#allocation6], 320  }
  0x31   :  { %871 = vsyncadd [#allocation6], 4294966976 }
  0x32   :  { %872 = dma.done.wait [#allocation9], 128  }
  0x33   :  { %873 = vsyncadd [#allocation9], 4294967168  ;;  %v882_v0 = vmov 0.0   ;;  %vm883_vm0 = vmmov 0   ;;  %vm91_vm1 = vcmask 261120   ;;  %v737_v1 = vld [vmem:[#allocation7 + $0x8] sm:$0xff]  }
  0x34   :  { %688 = vmatprep.subr.bf16.mxu0 %v882_v0  ;;  %696 = vmatprep.subr.bf16.mxu1 %v882_v0  ;;  %v738_v2 = vld [vmem:[#allocation8] sm:$0xff]   ;;  %v99_v3 = vsel %vm91_vm1, %v737_v1, 0  ;;  %v739_v5 = vld [vmem:[#allocation7] sm:$0xff]   ;;  %v141_v6 = vld [vmem:[#allocation5] sm:$0xf]  ;;  %s884_s2 = smov 120  }
  0x35   :  { %698 = vmatprep.mubr.msk.bf16.mxu1 %vm883_vm0, %v882_v0  ;;  %692 = vmatprep.mubr.msk.bf16.mxu0 %vm883_vm0, %v882_v0  ;;  %v153_v4 = vsel %vm91_vm1, %v738_v2, 0  ;;  %v96_v7 = vsel %vm91_vm1, %v739_v5, 0  ;;  %v76_v8 = vld [vmem:[#allocation2] sm:$0xf]  ;;  %s885_s3 = smov 112   ;;  %s886_s17 = smov 104  }
  0x36   :  { %689 = vmatpush3.bf16.xpose.msra.mxu0 %v99_v3  ;;  %697 = vmatpush3.bf16.xpose.msra.mxu1 %v153_v4  ;;  %v971_v19 = vld [vmem:[%s1025_s5] ss:$0 sm:$0xff]  ;;  %s887_s20 = smov 8   ;;  %vm198_vm2 = vcmask 64512   ;;  %s888_s22 = smov 16  }
  0x37   :  { %690 = vmatprep.subr.bf16.mxu0 %v882_v0  ;;  %702 = vmatprep.subr.mxu1 %v882_v0  ;;  %v666_v28 = vld [vmem:[%s1024_s4] ss:$0 sm:$0xff]  ;;  %s889_s23 = smov 24   ;;  %s890_s4 = smov [#allocation10]  }
  0x38   :  { %s649_s24 = sshll.u32 %s890_s4, 4  ;;  %s650_s24 = int_to_ptr.vmem [resolvable:$true] %s649_s24 }
  0x39   :  { %s848_s25 = scalar_lea.vmem %s650_s24, 128  ;;  %p853_p7 = scmp.lt.s32.totalorder %s650_s24, %s650_s24 }
  0x3a   :  { %p849_p6 = scmp.ne.s32.totalorder %s650_s24, %s848_s25  ;;  %p854_p8 = scmp.lt.s32.totalorder %s848_s25, %s848_s25 }
  0x3c   :  { %p855_p9 = por %p854_p8, %p853_p7 }
  0x3d   :  { %699 = vmatmul.mubr.msk.bf16.vlgmr.msra.gmra.mxu1 %vm91_vm1, %v141_v6 }
  0x3e   :  { %691 = vmatpush3.bf16.xpose.msra.mxu0 %v96_v7  ;;  %704 = vmatprep.mubr.msk.f32.mxu1 %vm883_vm0, %v882_v0  ;;  %p856_p10 = pnand %p855_p9, %p849_p6 }
  0x3f   :  { %712 = vmatprep.subr.mxu0 %v882_v0 }
  0x45   :  { %693 = vmatmul.mubr.msk.bf16.vlgmr.msra.gmra.mxu0 %vm91_vm1, %v76_v8 }
  0x46   :  { %714 = vmatprep.mubr.msk.f32.mxu0 %vm883_vm0, %v882_v0 }
  0xfd   :  { %v956_v9 = vpop.f32.mrf.mxu1 }
  0xfe   :  { %v197_v10 = vmul.f32 %v956_v9, %v956_v9 }
  0xff   :  { %v700_v11 = vpop.f32.mrf.mxu1 }
 0x100   :  { %215 = vrot.lane.b32.xlu0 %v197_v10, %s884_s2  ;;  %v199_v29 = vsel %vm198_vm2, %v197_v10, 0.0 }
 0x101   :  { %v192_v12 = vpop.f32.mrf.mxu1 }
 0x103   :  { %v701_v13 = vpop.f32.mrf.mxu1 }
 0x105   :  { %v961_v14 = vpop.f32.mrf.mxu0 }
 0x106   :  { %v229_v15 = vmul.f32 %v961_v14, %v961_v14 }
 0x107   :  { %v694_v16 = vpop.f32.mrf.mxu0 }
 0x108   :  { %434 = vrot.lane.b32.xlu1 %v229_v15, %s885_s3  ;;  %333 = vrot.lane.b32.xlu0 %v229_v15, %s884_s2  ;;  %v230_v30 = vsel %vm198_vm2, %v229_v15, 0.0 }
 0x109   :  { %v138_v17 = vpop.f32.mrf.mxu0 }
 0x10b   :  { %v695_v18 = vpop.f32.mrf.mxu0 }
 0x10c   :  { %540 = vrot.lane.b32.xlu1 %v229_v15, %s886_s17 }
 0x110   :  { %225 = vrot.lane.b32.xlu1 %v971_v19, %s887_s20 }
 0x172   :  { %v216_v20 = vpop.permute.xlu0 %215 }
 0x173   :  { %v218_v21 = vsel %vm198_vm2, %v216_v20, 0.0 }
 0x174   :  { %219 = vadd.xlane.f32.xlu0 %v218_v21 }
 0x17a   :  { %v435_v22 = vpop.permute.xlu1 %434  ;;  %v334_v23 = vpop.permute.xlu0 %333 }
 0x17b   :  { %v437_v24 = vsel %vm198_vm2, %v435_v22, 0.0  ;;  %v336_v25 = vsel %vm198_vm2, %v334_v23, 0.0 }
 0x17c   :  { %438 = vadd.xlane.f32.xlu0 %v437_v24  ;;  %337 = vadd.xlane.f32.xlu1 %v336_v25 }
 0x17e   :  { %v541_v26 = vpop.permute.xlu1 %540 }
 0x17f   :  { %v543_v27 = vsel %vm198_vm2, %v541_v26, 0.0 }
 0x180   :  { %544 = vadd.xlane.f32.xlu0 %v543_v27 }
 0x182   :  { %v226_v33 = vpop.permute.xlu1 %225 }
 0x18d   :  { %444 = vrot.lane.b32.xlu1 %v666_v28, %s888_s22 }
 0x191   :  { %550 = vrot.lane.b32.xlu1 %v666_v28, %s889_s23 }
 0x196   :  { %343 = vrot.lane.b32.xlu0 %v666_v28, %s887_s20 }
 0x1b5   :  { %200 = vadd.xlane.f32.xlu0 %v199_v29  ;;  %231 = vadd.xlane.f32.xlu1 %v230_v30 }
 0x1fd   :  { %v220_v31 = vpop.xlane.xlu0 %219 }
 0x1fe   :  { %v221_v32 = vmul.f32 0.125, %v220_v31 }
 0x200   :  { %v222_v34 = vadd.f32 1e-06, %v221_v32 }
 0x202   :  { %740 = vrsqrt.f32 %v222_v34 }
 0x205   :  { %v338_v35 = vpop.xlane.xlu1 %337  ;;  %v439_v36 = vpop.xlane.xlu0 %438 }
 0x206   :  { %v339_v37 = vmul.f32 0.125, %v338_v35  ;;  %v440_v38 = vmul.f32 0.125, %v439_v36 }
 0x208   :  { %v340_v39 = vadd.f32 1e-06, %v339_v37  ;;  %v441_v40 = vadd.f32 1e-06, %v440_v38 }
 0x209   :  { %v545_v41 = vpop.xlane.xlu0 %544  ;;  %v445_v47 = vpop.permute.xlu1 %444 }
 0x20a   :  { %742 = vrsqrt.f32 %v340_v39  ;;  %v546_v42 = vmul.f32 0.125, %v545_v41 }
 0x20b   :  { %744 = vrsqrt.f32 %v441_v40 }
 0x20c   :  { %v547_v43 = vadd.f32 1e-06, %v546_v42 }
 0x20d   :  { %v344_v49 = vpop.permute.xlu0 %343  ;;  %v551_v56 = vpop.permute.xlu1 %550 }
 0x20e   :  { %746 = vrsqrt.f32 %v547_v43 }
 0x20f   :  { %v741_v44 = vpop.eup %740 }
 0x210   :  { %v224_v45 = vmul.f32 %v741_v44, %v956_v9 }
 0x212   :  { %v228_v46 = vmul.f32 %v226_v33, %v224_v45 }
 0x214   :  { %452 = vrot.lane.b32.xlu0 %v228_v46, %s884_s2 }
 0x217   :  { %v743_v48 = vpop.eup %742 }
 0x218   :  { %v745_v50 = vpop.eup %744  ;;  %v342_v51 = vmul.f32 %v743_v48, %v961_v14 }
 0x219   :  { %v443_v52 = vmul.f32 %v745_v50, %v961_v14 }
 0x21a   :  { %v346_v53 = vmul.f32 %v344_v49, %v342_v51 }
 0x21b   :  { %v747_v54 = vpop.eup %746  ;;  %v447_v55 = vmul.f32 %v445_v47, %v443_v52 }
 0x21c   :  { %348 = vrot.lane.b32.xlu1 %v346_v53, %s884_s2  ;;  %v549_v57 = vmul.f32 %v747_v54, %v961_v14 }
 0x21d   :  { %449 = vrot.lane.b32.xlu0 %v447_v55, %s885_s3 }
 0x21e   :  { %v553_v58 = vmul.f32 %v551_v56, %v549_v57 }
 0x220   :  { %555 = vrot.lane.b32.xlu1 %v553_v58, %s886_s17 }
 0x23e   :  { %v201_v59 = vpop.xlane.xlu0 %200  ;;  %v232_v60 = vpop.xlane.xlu1 %231 }
 0x23f   :  { %v203_v61 = vmul.f32 0.125, %v201_v59  ;;  %v233_v62 = vmul.f32 0.125, %v232_v60 }
 0x241   :  { %v204_v63 = vadd.f32 1e-06, %v203_v61  ;;  %v234_v1 = vadd.f32 1e-06, %v233_v62 }
 0x243   :  { %748 = vrsqrt.f32 %v204_v63 }
 0x244   :  { %750 = vrsqrt.f32 %v234_v1 }
 0x250   :  { %v749_v2 = vpop.eup %748 }
 0x251   :  { %v751_v3 = vpop.eup %750  ;;  %v206_v4 = vmul.f32 %v749_v2, %v956_v9 }
 0x252   :  { %v236_v5 = vmul.f32 %v751_v3, %v961_v14 }
 0x253   :  { %v213_v6 = vmul.f32 %v971_v19, %v206_v4 }
 0x254   :  { %v243_v7 = vmul.f32 %v666_v28, %v236_v5 }
 0x255   :  { %703 = vmatpush3.xpose.msk.msra.mxu1 %vm198_vm2, %v213_v6 }
 0x256   :  { %707 = vmatprep.subr.mxu1 %v882_v0 }
 0x258   :  { %705 = vmatmul.mubr.msk.f32.vlgmr.msra.gmra.mxu1 %vm198_vm2, %v243_v7 }
 0x259   :  { %708 = vmatpush3.xpose.msk.msra.mxu1 %vm198_vm2, %v213_v6  ;;  %709 = vmatprep.mubr.msk.f32.mxu1 %vm883_vm0, %v882_v0 }
 0x25a   :  { %717 = vmatprep.subr.mxu1 %v882_v0 }
 0x286   :  { %v453_v8 = vpop.permute.xlu0 %452 }
 0x287   :  { %713 = vmatpush3.xpose.msk.msra.mxu0 %vm198_vm2, %v453_v8 }
 0x28e   :  { %v349_v9 = vpop.permute.xlu1 %348 }
 0x28f   :  { %v450_v10 = vpop.permute.xlu0 %449  ;;  %710 = vmatmul.mubr.msk.f32.vlgmr.msra.gmra.mxu1 %vm198_vm2, %v349_v9 }
 0x290   :  { %715 = vmatmul.mubr.msk.f32.vlgmr.msra.gmra.mxu0 %vm198_vm2, %v450_v10  ;;  %718 = vmatpush3.xpose.msk.msra.mxu1 %vm198_vm2, %v453_v8 }
 0x291   :  { %719 = vmatprep.mubr.msk.f32.mxu1 %vm883_vm0, %v882_v0 }
 0x292   :  { %v556_v11 = vpop.permute.xlu1 %555 }
 0x293   :  { %720 = vmatmul.mubr.msk.f32.vlgmr.msra.gmra.mxu1 %vm198_vm2, %v556_v11 }
 0x318   :  { %v316_v12 = vpop.f32.mrf.mxu1 }
 0x319   :  { %v320_v13 = vsel %vm198_vm2, %v316_v12, -inf }
 0x31a   :  { %321 = vmax.xlane.f32.xlu0 %v320_v13  ;;  %v706_v14 = vpop.f32.mrf.mxu1 }
 0x34f   :  { %v418_v15 = vpop.f32.mrf.mxu1 }
 0x350   :  { %v524_v16 = vpop.f32.mrf.mxu0  ;;  %v422_v17 = vsel %vm198_vm2, %v418_v15, -inf }
 0x351   :  { %423 = vmax.xlane.f32.xlu1 %v422_v17  ;;  %v711_v18 = vpop.f32.mrf.mxu1  ;;  %v528_v19 = vsel %vm198_vm2, %v524_v16, -inf }
 0x352   :  { %529 = vmax.xlane.f32.xlu0 %v528_v19  ;;  %v716_v20 = vpop.f32.mrf.mxu0 }
 0x353   :  { %v625_v21 = vpop.f32.mrf.mxu1 }
 0x354   :  { %v629_v0 = vsel %vm198_vm2, %v625_v21, -inf }
 0x355   :  { %v721_v22 = vpop.f32.mrf.mxu1 }
 0x356   :  { %630 = vmax.xlane.f32.xlu0 %v629_v0 }
 0x3a3   :  { %v322_v23 = vpop.xlane.xlu0 %321 }
 0x3a4   :  { %v323_v24 = vsub.f32 %v316_v12, %v322_v23 }
 0x3a6   :  { %v324_v25 = vmul.f32 1.442695, %v323_v24 }
 0x3a8   :  { %752 = vpow2.f32 %v324_v25 }
 0x3b5   :  { %v753_v26 = vpop.eup %752 }
 0x3b6   :  { %v326_v27 = vsel %vm198_vm2, %v753_v26, 0.0 }
 0x3b7   :  { %327 = vadd.xlane.f32.xlu1 %v326_v27 }
 0x3da   :  { %v424_v28 = vpop.xlane.xlu1 %423 }
 0x3db   :  { %v425_v29 = vsub.f32 %v418_v15, %v424_v28  ;;  %v530_v30 = vpop.xlane.xlu0 %529 }
 0x3dc   :  { %v531_v31 = vsub.f32 %v524_v16, %v530_v30 }
 0x3dd   :  { %v426_v32 = vmul.f32 1.442695, %v425_v29 }
 0x3de   :  { %v532_v33 = vmul.f32 1.442695, %v531_v31 }
 0x3df   :  { %754 = vpow2.f32 %v426_v32  ;;  %v631_v34 = vpop.xlane.xlu0 %630 }
 0x3e0   :  { %756 = vpow2.f32 %v532_v33  ;;  %v632_v35 = vsub.f32 %v625_v21, %v631_v34 }
 0x3e2   :  { %v633_v36 = vmul.f32 1.442695, %v632_v35 }
 0x3e4   :  { %758 = vpow2.f32 %v633_v36 }
 0x3ec   :  { %v755_v37 = vpop.eup %754 }
 0x3ed   :  { %v757_v38 = vpop.eup %756  ;;  %v428_v39 = vsel %vm198_vm2, %v755_v37, 0.0 }
 0x3ee   :  { %429 = vadd.xlane.f32.xlu0 %v428_v39  ;;  %v534_v40 = vsel %vm198_vm2, %v757_v38, 0.0 }
 0x3ef   :  { %535 = vadd.xlane.f32.xlu1 %v534_v40 }
 0x3f1   :  { %v759_v41 = vpop.eup %758 }
 0x3f2   :  { %v635_v42 = vsel %vm198_vm2, %v759_v41, 0.0 }
 0x3f3   :  { %636 = vadd.xlane.f32.xlu0 %v635_v42 }
 0x440   :  { %v328_v43 = vpop.xlane.xlu1 %327 }
 0x441   :  { %760 = vrcp.f32 %v328_v43 }
 0x44e   :  { %v761_v47 = vpop.eup %760 }
 0x44f   :  { %v330_v50 = vmul.f32 %v761_v47, %v753_v26 }
 0x477   :  { %v430_v44 = vpop.xlane.xlu0 %429 }
 0x478   :  { %v536_v45 = vpop.xlane.xlu1 %535  ;;  %762 = vrcp.f32 %v430_v44 }
 0x479   :  { %764 = vrcp.f32 %v536_v45 }
 0x47c   :  { %v637_v46 = vpop.xlane.xlu0 %636 }
 0x47d   :  { %766 = vrcp.f32 %v637_v46 }
 0x485   :  { %v763_v48 = vpop.eup %762 }
 0x486   :  { %v765_v49 = vpop.eup %764  ;;  %v432_v51 = vmul.f32 %v763_v48, %v755_v37 }
 0x487   :  { %v538_v53 = vmul.f32 %v765_v49, %v757_v38 }
 0x488   :  { %v433_v52 = vadd.f32 %v432_v51, %v330_v50 }
 0x48a   :  { %v767_v54 = vpop.eup %766  ;;  %v539_v55 = vadd.f32 %v538_v53, %v433_v52 }
 0x48b   :  { %v639_v56 = vmul.f32 %v767_v54, %v759_v41 }
 0x48d   :  { %v640_v57 = vadd.f32 %v639_v56, %v539_v55 }
 0x48f   :  { %v641_v58 = vmul.f32 0.25, %v640_v57 }
 0x491   :  { %642 = vst.msk [vmem:[#allocation10] sm:$0xff] %vm198_vm2, %v641_v58 }
 0x492   :  { %859 = shalt.err (!%p856_p10)
}
 0x493   :  { %652 = dma.vmem_to_hbm [thread:$0]  %s650_s24, 128, %s1026_s6, [#allocation4]  }
 0x494   :  { %874 = dma.done.wait [#allocation4], 128  }
 0x495   :  { %875 = vsyncadd [#allocation4], 4294967168 }
 0x496   :  { %656 = vsyncpa [#allocation3], 1 }
 0x497   :  { %657 = vsyncpa [#allocation6], 1 }
 0x498   :  { %658 = vsyncpa [#allocation9], 1 }
 0x499   :  { %659 = vsyncpa [#allocation4], 1 }

</bundles_post_ra>
